<compile_context>
chip_gen: v6e
topology: v6e:2x2x1
jax: 0.10.0
libtpu: 0.0.40
codegen_flags: <defaults>
</compile_context>

<pallas_src>
import jax
import jax.numpy as jnp
from jax.experimental import pallas as pl
from jax.experimental.pallas import tpu as pltpu

# Whole-array VMEM copy below this size (in + out = 2x array stays well under
# the 16 MiB default scoped-VMEM limit on v5e; even more headroom on v6e/v7x).
_SMALL_BYTES = 4 * 1024 * 1024
# Above this size, split the HBM->HBM copy into 2 DMAs so v7x's two
# TensorCores can both participate.
_CHUNK_SPLIT_BYTES = 8 * 1024 * 1024


# ----------------------------- kernels --------------------------------------


def _copy_kernel(x_ref, o_ref):
    # Whole-tile VMEM copy (identity forward).
    o_ref[...] = x_ref[...]


def _dma_copy_full_kernel(x_hbm, o_hbm, sem):
    # Single HBM->HBM DMA of the entire array; no VMEM staging.
    cp = pltpu.make_async_copy(x_hbm, o_hbm, sem)
    cp.start()
    cp.wait()


def _make_chunked_dma_kernel(rows_per_chunk):
    # One HBM->HBM DMA per grid step over a disjoint leading-dim slice.
    def kernel(x_hbm, o_hbm, sem):
        i = pl.program_id(0)
        start = i * rows_per_chunk
        cp = pltpu.make_async_copy(
            x_hbm.at[pl.ds(start, rows_per_chunk)],
            o_hbm.at[pl.ds(start, rows_per_chunk)],
            sem,
        )
        cp.start()
        cp.wait()

    return kernel


# ----------------------------- wrappers --------------------------------------


def _whole_array_copy(x, donate=False):
    # Single full-array block (full-extent blocks are always legal shapes).
    return pl.pallas_call(
        _copy_kernel,
        out_shape=jax.ShapeDtypeStruct(x.shape, x.dtype),
        input_output_aliases={0: 0} if donate else {},
    )(x)


def _hbm_dma_copy(x, donate=False):
    nbytes = x.size * jnp.dtype(x.dtype).itemsize
    rows = x.shape[0]
    aliases = {0: 0} if donate else {}

    split = nbytes >= _CHUNK_SPLIT_BYTES and rows >= 2 and rows % 2 == 0
    if not split:
        return pl.pallas_call(
            _dma_copy_full_kernel,
            out_shape=jax.ShapeDtypeStruct(x.shape, x.dtype),
            in_specs=[pl.BlockSpec(memory_space=pl.ANY)],
            out_specs=pl.BlockSpec(memory_space=pl.ANY),
            scratch_shapes=[pltpu.SemaphoreType.DMA(())],
            input_output_aliases=aliases,
        )(x)

    half = rows // 2
    return pl.pallas_call(
        _make_chunked_dma_kernel(half),
        out_shape=jax.ShapeDtypeStruct(x.shape, x.dtype),
        grid=(2,),
        in_specs=[pl.BlockSpec(memory_space=pl.ANY)],
        out_specs=pl.BlockSpec(memory_space=pl.ANY),
        scratch_shapes=[pltpu.SemaphoreType.DMA(())],
        input_output_aliases=aliases,
        compiler_params=pltpu.CompilerParams(
            # Only v7x (2 TCs/chip) actually shards this; harmless elsewhere.
            dimension_semantics=("parallel",),
        ),
    )(x)


def identity_forward(x, donate=False):
    """Identity forward pass (matches Model.forward) via Pallas.

    donate=True wires input_output_aliases={0: 0} on every Pallas path so the
    copy can be elided; the input buffer is then donated and must not be
    reused by the caller.
    """
    if x.ndim == 0 or x.size == 0:
        # Nothing to tile / nothing to copy; returning x is exact.
        return x

    nbytes = x.size * jnp.dtype(x.dtype).itemsize
    if nbytes <= _SMALL_BYTES:
        return _whole_array_copy(x, donate=donate)
    return _hbm_dma_copy(x, donate=donate)


# ----------------------------- self-test --------------------------------------


if __name__ == "__main__":
    key = jax.random.PRNGKey(0)
    k1, k2, k3, k4 = jax.random.split(key, 4)

    # 1) The DQN's actual input: a (batch=2, num_inputs=4) f32 state
    #    -> tiny whole-array VMEM copy.
    x_small = jax.random.normal(k1, (2, 4), dtype=jnp.float32)
    y_small = jax.block_until_ready(identity_forward(x_small))
    assert y_small.shape == x_small.shape and y_small.dtype == x_small.dtype
    assert bool(jnp.array_equal(y_small, x_small)), "identity mismatch (small f32)"

    # 2) bf16 with awkward (non-8x128) dims -> still whole-array path
    #    (full-extent blocks are always legal).
    x_bf16 = jax.random.normal(k2, (33, 20), dtype=jnp.float32).astype(jnp.bfloat16)
    y_bf16 = jax.block_until_ready(identity_forward(x_bf16))
    assert bool(jnp.array_equal(y_bf16, x_bf16)), "identity mismatch (bf16)"

    # 3) ~5 MiB, odd row count -> single direct HBM->HBM DMA (no VMEM staging,
    #    no factorization requirements).
    x_med = jax.random.normal(k3, (1027, 1280), dtype=jnp.float32)
    y_med = jax.block_until_ready(identity_forward(x_med))
    assert bool(jnp.array_equal(y_med, x_med)), "identity mismatch (medium DMA)"

    # 4) 8 MiB, even rows -> 2-way chunked HBM->HBM DMA over a parallel grid
    #    (v7x megacore-friendly; sequential and still cheap on v5e/v6e).
    x_big = jax.random.normal(k4, (2048, 1024), dtype=jnp.float32)
    y_big = jax.block_until_ready(identity_forward(x_big))
    assert bool(jnp.array_equal(y_big, x_big)), "identity mismatch (big chunked DMA)"

    print("KERNEL_OK")
</pallas_src>

<mosaic_0001>
module attributes {stable_mosaic.version = 11 : i64} {
  func.func @_copy_kernel(%arg0: memref<2x4xf32, #tpu.memory_space<vmem>>, %arg1: memref<2x4xf32, #tpu.memory_space<vmem>>) attributes {dimension_semantics = [], scalar_prefetch = 0 : i64, scratch_operands = 0 : i64, tpu.core_type = #tpu.core_type<tc>} {
    %c0 = arith.constant 0 : index
    %c0_0 = arith.constant 0 : index
    %0 = vector.load %arg0[%c0, %c0_0] : memref<2x4xf32, #tpu.memory_space<vmem>>, vector<2x4xf32>
    %c0_1 = arith.constant 0 : index
    %c0_2 = arith.constant 0 : index
    %1 = vector.load %arg1[%c0_1, %c0_2] : memref<2x4xf32, #tpu.memory_space<vmem>>, vector<2x4xf32>
    tpu.vector_store %arg1[%c0_1, %c0_2], %0 {strides = array<i32>} : memref<2x4xf32, #tpu.memory_space<vmem>>, vector<2x4xf32>,
    return
  }
}

</mosaic_0001>

<bundles_post_ra>
// kernel: tpu_custom_call.1
= control target key start
LH: loop header
LB: loop body
LE: loop exit
PB: predicated region body
PF: predicated region fallthrough
CT: control target
= control target key end

     0   :  { %6 = vsyncpa [#allocation3], 0  ;;  %s103_s0 = inlined_call_operand.hbm [shape: f32[2,4], index: 0, kind: input, shape index: {}]   ;;  %s104_s1 = inlined_call_operand.hbm [shape: f32[2,4], index: 1, kind: output, shape index: {}]  }
   0x1   :  { %7 = vsyncpa [#allocation4], 0  ;;  %s85_s6 = smov [#allocation2]  }
   0x2   :  { %s14_s7 = sshll.u32 %s85_s6, 4  ;;  %s15_s7 = int_to_ptr.vmem [resolvable:$true] %s14_s7 }
   0x3   :  { %s49_s8 = scalar_lea.vmem %s15_s7, 32  ;;  %p54_p1 = scmp.lt.s32.totalorder %s15_s7, %s15_s7 }
   0x4   :  { %p50_p0 = scmp.ne.s32.totalorder %s15_s7, %s49_s8  ;;  %p55_p2 = scmp.lt.s32.totalorder %s49_s8, %s49_s8 }
   0x6   :  { %p56_p3 = por %p55_p2, %p54_p1 }
   0x8   :  { %p57_p4 = pnand %p56_p3, %p50_p0 }
   0xa   :  { %60 = shalt.err (!%p57_p4)
}
   0xb   :  { %17 = dma.hbm_to_vmem [thread:$0]  %s103_s0, 32, %s15_s7, [#allocation3]  }
   0xc   :  { %81 = dma.done.wait [#allocation3], 32  }
   0xd   :  { %82 = vsyncadd [#allocation3], 4294967264  ;;  %s86_s11 = smov [#allocation5]   ;;  %vm22_vm0 = vcmask 25600   ;;  %v21_v0 = vld [vmem:[#allocation2] sm:$0x3] }
   0xe   :  { %s30_s12 = sshll.u32 %s86_s11, 4  ;;  %23 = vst.msk [vmem:[#allocation5] sm:$0x3] %vm22_vm0, %v21_v0  ;;  %s31_s12 = int_to_ptr.vmem [resolvable:$true] %s30_s12 }
   0xf   :  { %s61_s13 = scalar_lea.vmem %s31_s12, 32  ;;  %p66_p6 = scmp.lt.s32.totalorder %s31_s12, %s31_s12 }
  0x10   :  { %p62_p5 = scmp.ne.s32.totalorder %s31_s12, %s61_s13  ;;  %p67_p7 = scmp.lt.s32.totalorder %s61_s13, %s61_s13 }
  0x12   :  { %p68_p8 = por %p67_p7, %p66_p6 }
  0x14   :  { %p69_p9 = pnand %p68_p8, %p62_p5 }
  0x16   :  { %72 = shalt.err (!%p69_p9)
}
  0x17   :  { %33 = dma.vmem_to_hbm [thread:$0]  %s31_s12, 32, %s104_s1, [#allocation4]  }
  0x18   :  { %83 = dma.done.wait [#allocation4], 32  }
  0x19   :  { %84 = vsyncadd [#allocation4], 4294967264 }
  0x1a   :  { %37 = vsyncpa [#allocation3], 1 }
  0x1b   :  { %38 = vsyncpa [#allocation4], 1 }

</bundles_post_ra>
